<compile_context>
chip_gen: v6e
topology: v6e:2x2x1
jax: 0.10.0
libtpu: 0.0.40
codegen_flags: <defaults>
</compile_context>

<pallas_src>
import jax
import jax.numpy as jnp
from jax.experimental import pallas as pl
from jax.experimental.pallas import tpu as pltpu


def _prompt_identity_kernel(begin_ref, end_ref, begin_out_ref, end_out_ref):
    # Identity passthrough of the two prompt-embedding parameters.  Outputs
    # alias the inputs at the XLA level, so this writes back into the same
    # logical buffers; the copy is 2 x (3,32) f32 = 768 bytes (one vreg each).
    begin_out_ref[...] = begin_ref[...]
    end_out_ref[...] = end_ref[...]


def prompt_tuning_forward_pallas(begin_embedding, end_embedding):
    """Pallas materialization of PromptTuning.forward() (identity passthrough)."""
    out_shapes = (
        jax.ShapeDtypeStruct(begin_embedding.shape, begin_embedding.dtype),
        jax.ShapeDtypeStruct(end_embedding.shape, end_embedding.dtype),
    )

    # Whole-array VMEM residency: no grid, no block tiling, no auto-pipeline
    # double buffering for a copy smaller than one vreg per operand.
    vmem_spec = pl.BlockSpec(memory_space=pltpu.MemorySpace.VMEM)

    return pl.pallas_call(
        _prompt_identity_kernel,
        out_shape=out_shapes,
        in_specs=[vmem_spec, vmem_spec],
        out_specs=(vmem_spec, vmem_spec),
        # Alias outputs onto inputs: no fresh HBM output buffers, no net data
        # movement beyond the tiny round trip; only launch overhead remains.
        input_output_aliases={0: 0, 1: 1},
    )(begin_embedding, end_embedding)


def prompt_tuning_forward(begin_embedding, end_embedding):
    """Recommended (zero-copy) forward: the module's forward is a pure passthrough."""
    return begin_embedding, end_embedding


class PromptTuningPallas:
    """Deterministic synthetic stand-in for the PyTorch PromptTuning module.

    Instead of querying a BERT model / tokenizer, the prompt embeddings are
    initialized deterministically from a PRNG key with the same shapes as the
    PyTorch module's parameters: (token_num, hidden) each.
    """

    def __init__(self, key, token_num=3, hidden=32, dtype=jnp.float32):
        kb, ke = jax.random.split(key)
        # These mimic `encoded_vector[0, 1:1+token_num, :]` slices of a BERT
        # last_hidden_state — here just deterministic random parameters.
        self.begin_embedding = jax.random.normal(kb, (token_num, hidden), dtype)
        self.end_embedding = jax.random.normal(ke, (token_num, hidden), dtype)
        # TODO(synk): self.prompt_set (Linear/ReLU/Dropout over vocab) is dead
        # code in the reference forward() and is intentionally not implemented.

    def forward(self):
        # Zero-copy passthrough (matches PyTorch semantics exactly).
        return prompt_tuning_forward(self.begin_embedding, self.end_embedding)

    def forward_pallas(self):
        # Pallas-kernel version (identity copy with output aliasing).
        return prompt_tuning_forward_pallas(self.begin_embedding, self.end_embedding)


if __name__ == "__main__":
    key = jax.random.PRNGKey(0)
    token_num, hidden = 3, 32

    model = PromptTuningPallas(key, token_num=token_num, hidden=hidden)

    # Run the Pallas kernel once and block on the results.
    begin_out, end_out = model.forward_pallas()
    jax.block_until_ready((begin_out, end_out))

    # Zero-copy forward (reference semantics).
    begin_ref, end_ref = model.forward()

    # Verify passthrough semantics (forward returns the parameters as-is).
    assert begin_out.shape == (token_num, hidden)
    assert end_out.shape == (token_num, hidden)
    assert jnp.allclose(begin_out, model.begin_embedding)
    assert jnp.allclose(end_out, model.end_embedding)
    assert jnp.allclose(begin_out, begin_ref)
    assert jnp.allclose(end_out, end_ref)

    print("KERNEL_OK")
</pallas_src>

<mosaic_0001>
module attributes {stable_mosaic.version = 11 : i64} {
  func.func @_prompt_identity_kernel(%arg0: memref<3x32xf32, #tpu.memory_space<vmem>>, %arg1: memref<3x32xf32, #tpu.memory_space<vmem>>, %arg2: memref<3x32xf32, #tpu.memory_space<vmem>>, %arg3: memref<3x32xf32, #tpu.memory_space<vmem>>) attributes {dimension_semantics = [], scalar_prefetch = 0 : i64, scratch_operands = 0 : i64, tpu.core_type = #tpu.core_type<tc>} {
    %c0 = arith.constant 0 : index
    %c0_0 = arith.constant 0 : index
    %0 = vector.load %arg0[%c0, %c0_0] : memref<3x32xf32, #tpu.memory_space<vmem>>, vector<3x32xf32>
    %c0_1 = arith.constant 0 : index
    %c0_2 = arith.constant 0 : index
    %1 = vector.load %arg2[%c0_1, %c0_2] : memref<3x32xf32, #tpu.memory_space<vmem>>, vector<3x32xf32>
    tpu.vector_store %arg2[%c0_1, %c0_2], %0 {strides = array<i32>} : memref<3x32xf32, #tpu.memory_space<vmem>>, vector<3x32xf32>,
    %c0_3 = arith.constant 0 : index
    %c0_4 = arith.constant 0 : index
    %2 = vector.load %arg1[%c0_3, %c0_4] : memref<3x32xf32, #tpu.memory_space<vmem>>, vector<3x32xf32>
    %c0_5 = arith.constant 0 : index
    %c0_6 = arith.constant 0 : index
    %3 = vector.load %arg3[%c0_5, %c0_6] : memref<3x32xf32, #tpu.memory_space<vmem>>, vector<3x32xf32>
    tpu.vector_store %arg3[%c0_5, %c0_6], %2 {strides = array<i32>} : memref<3x32xf32, #tpu.memory_space<vmem>>, vector<3x32xf32>,
    return
  }
}

</mosaic_0001>

<bundles_post_ra>
// kernel: tpu_custom_call.1
= control target key start
LH: loop header
LB: loop body
LE: loop exit
PB: predicated region body
PF: predicated region fallthrough
CT: control target
= control target key end

     0   :  { %9 = vsyncpa [#allocation3], 0  ;;  %s202_s0 = inlined_call_operand.hbm [shape: f32[3,32], index: 0, kind: input, shape index: {}, may-alias: {0,2}]   ;;  %s203_s1 = inlined_call_operand.hbm [shape: f32[3,32], index: 1, kind: input, shape index: {}, may-alias: {1,3}]   ;;  %s204_s2 = inlined_call_operand.hbm [shape: f32[3,32], index: 2, kind: output, shape index: {0}, may-alias: {0,2}]   ;;  %s205_s3 = inlined_call_operand.hbm [shape: f32[3,32], index: 3, kind: output, shape index: {1}, may-alias: {1,3}]  }
   0x1   :  { %10 = vsyncpa [#allocation6], 0 }
   0x2   :  { %11 = vsyncpa [#allocation4], 0 }
   0x3   :  { %12 = vsyncpa [#allocation9], 0  ;;  %s166_s12 = smov [#allocation2]   ;;  %s167_s14 = smov [#allocation5]  }
   0x4   :  { %s19_s13 = sshll.u32 %s166_s12, 4  ;;  %s29_s15 = sshll.u32 %s167_s14, 4  ;;  %s20_s13 = int_to_ptr.vmem [resolvable:$true] %s19_s13  ;;  %s30_s15 = int_to_ptr.vmem [resolvable:$true] %s29_s15 }
   0x5   :  { %s86_s16 = scalar_lea.vmem %s20_s13, 64  ;;  %p91_p1 = scmp.lt.s32.totalorder %s20_s13, %s20_s13 }
   0x6   :  { %p87_p0 = scmp.ne.s32.totalorder %s20_s13, %s86_s16  ;;  %p92_p2 = scmp.lt.s32.totalorder %s86_s16, %s86_s16 }
   0x8   :  { %p93_p3 = por %p92_p2, %p91_p1 }
   0xa   :  { %p94_p4 = pnand %p93_p3, %p87_p0 }
   0xc   :  { %97 = shalt.err (!%p94_p4)
}
   0xd   :  { %22 = dma.hbm_to_vmem [thread:$0]  %s202_s0, 64, %s20_s13, [#allocation3]  }
   0xe   :  { %s106_s19 = scalar_lea.vmem %s30_s15, 64  ;;  %p111_p6 = scmp.lt.s32.totalorder %s30_s15, %s30_s15 }
   0xf   :  { %p107_p5 = scmp.ne.s32.totalorder %s30_s15, %s106_s19  ;;  %p112_p7 = scmp.lt.s32.totalorder %s106_s19, %s106_s19 }
  0x11   :  { %p113_p8 = por %p112_p7, %p111_p6 }
  0x13   :  { %p114_p9 = pnand %p113_p8, %p107_p5 }
  0x15   :  { %117 = shalt.err (!%p114_p9)
}
  0x16   :  { %32 = dma.hbm_to_vmem [thread:$0]  %s203_s1, 64, %s30_s15, [#allocation6]  }
  0x17   :  { %158 = dma.done.wait [#allocation3], 64  }
  0x18   :  { %159 = vsyncadd [#allocation3], 4294967232 }
  0x19   :  { %160 = dma.done.wait [#allocation6], 64  }
  0x1a   :  { %161 = vsyncadd [#allocation6], 4294967232  ;;  %s168_s22 = smov [#allocation7]   ;;  %s169_s24 = smov [#allocation8]   ;;  %vm40_vm0 = vcmask 256000  }
  0x1b   :  { %s50_s23 = sshll.u32 %s168_s22, 4  ;;  %s60_s25 = sshll.u32 %s169_s24, 4  ;;  %v39_v0 = vld [vmem:[#allocation2] sm:$0x7]  ;;  %v42_v1 = vld [vmem:[#allocation5] sm:$0x7]  ;;  %s51_s23 = int_to_ptr.vmem [resolvable:$true] %s50_s23  ;;  %s61_s25 = int_to_ptr.vmem [resolvable:$true] %s60_s25 }
  0x1c   :  { %41 = vst.msk [vmem:[#allocation7] sm:$0x7] %vm40_vm0, %v39_v0  ;;  %43 = vst.msk [vmem:[#allocation8] sm:$0x7] %vm40_vm0, %v42_v1  ;;  %s118_s0 = scalar_lea.vmem %s51_s23, 64  ;;  %p123_p11 = scmp.lt.s32.totalorder %s51_s23, %s51_s23 }
  0x1d   :  { %p119_p10 = scmp.ne.s32.totalorder %s51_s23, %s118_s0  ;;  %p124_p12 = scmp.lt.s32.totalorder %s118_s0, %s118_s0 }
  0x1f   :  { %p125_p13 = por %p124_p12, %p123_p11 }
  0x21   :  { %p126_p0 = pnand %p125_p13, %p119_p10 }
  0x23   :  { %129 = shalt.err (!%p126_p0)
}
  0x24   :  { %53 = dma.vmem_to_hbm [thread:$0]  %s51_s23, 64, %s204_s2, [#allocation4]  }
  0x25   :  { %s138_s27 = scalar_lea.vmem %s61_s25, 64  ;;  %p143_p2 = scmp.lt.s32.totalorder %s61_s25, %s61_s25 }
  0x26   :  { %p139_p1 = scmp.ne.s32.totalorder %s61_s25, %s138_s27  ;;  %p144_p3 = scmp.lt.s32.totalorder %s138_s27, %s138_s27 }
  0x28   :  { %p145_p4 = por %p144_p3, %p143_p2 }
  0x2a   :  { %p146_p5 = pnand %p145_p4, %p139_p1 }
  0x2c   :  { %149 = shalt.err (!%p146_p5)
}
  0x2d   :  { %63 = dma.vmem_to_hbm [thread:$0]  %s61_s25, 64, %s205_s3, [#allocation9]  }
  0x2e   :  { %162 = dma.done.wait [#allocation4], 64  }
  0x2f   :  { %163 = vsyncadd [#allocation4], 4294967232 }
  0x30   :  { %164 = dma.done.wait [#allocation9], 64  }
  0x31   :  { %165 = vsyncadd [#allocation9], 4294967232 }
  0x32   :  { %70 = vsyncpa [#allocation3], 1 }
  0x33   :  { %71 = vsyncpa [#allocation6], 1 }
  0x34   :  { %72 = vsyncpa [#allocation4], 1 }
  0x35   :  { %73 = vsyncpa [#allocation9], 1 }

</bundles_post_ra>
